<compile_context>
chip_gen: v7x
topology: tpu7x:2x2x1
jax: 0.10.0
libtpu: 0.0.40
codegen_flags: <defaults>
</compile_context>

<pallas_src>
import functools
import itertools

import numpy as np
import jax
import jax.numpy as jnp
from jax import lax
from jax.experimental import pallas as pl
from jax.experimental.pallas import tpu as pltpu

ALPHA = 200.0              # self.margin / auto_samemargin
BETA = 400.0
REL_MARGIN = BETA - ALPHA  # self.relative_margin


def _round_up(x, m):
    return ((x + m - 1) // m) * m


def _vmem_budget():
    """(physical VMEM, usable budget with ~25% headroom for compiler scratch)."""
    try:
        cap = int(pltpu.get_tpu_info().vmem_capacity_bytes)
    except Exception:  # pragma: no cover - conservative fallback (v7x per-TC)
        cap = 64 << 20
    return cap, (cap * 3) // 4


def _tile_footprint_bytes(tm, tn, tk, in_itemsize):
    b = 2 * tm * tk * in_itemsize       # LHS (tm, tk) tiles, double buffered
    b += 2 * tk * tn * in_itemsize      # RHS (tk, tn) tiles, double buffered
    b += 2 * tm * tn * 4                # f32 GM output tiles (also accumulator)
    b += 4 * (tm + tn) * 4              # row/col norms + labels (tiny)
    return b


def _choose_tiles(B_pad, D_pad, in_itemsize, budget):
    """Largest square (tm, tn) first (arithmetic intensity), then largest tk
    (tk == D removes the reduction axis accumulation entirely)."""
    mn_cands = [c for c in (2048, 1024, 512, 256, 128)
                if c <= B_pad and B_pad % c == 0] or [B_pad]
    tk_cands = [D_pad] + [c for c in (4096, 2048, 1024, 512, 256, 128)
                          if c < D_pad and D_pad % c == 0]
    for t_mn in mn_cands:
        for tk in tk_cands:
            if _tile_footprint_bytes(t_mn, t_mn, tk, in_itemsize) <= budget:
                return t_mn, t_mn, tk
    return 128, 128, 128  # always fits (~0.25 MiB in bf16)


def _gm_kernel(*refs, margin, relative_margin, mode, norm, single_k):
    if norm:
        xr_ref, xc_ref, tr_ref, tc_ref, gm_ref = refs
    else:
        xr_ref, xc_ref, sqr_ref, sqc_ref, tr_ref, tc_ref, gm_ref = refs

    # Gram chunk on the MXU: LHS (tm, tk), RHS (tk, tn) (wrapper-transposed),
    # standard contraction dims, f32 accumulation.
    prod = lax.dot_general(
        xr_ref[...], xc_ref[...],
        dimension_numbers=(((1,), (0,)), ((), ())),
        preferred_element_type=jnp.float32)

    def epilogue(gram):
        if norm:
            # norm == True branch of the module: dist = x @ x.T
            dist = gram
            hinge = jnp.maximum(0.0, dist - margin)
            same = jnp.maximum(0.0, (margin + relative_margin) - dist)
        else:
            # norm == False branch: |xi|^2 + |xj|^2 - 2 xi.xj
            dist = sqr_ref[...] + sqc_ref[...] - 2.0 * gram
            hinge = jnp.maximum(0.0, (margin + relative_margin) - dist)
            same = jnp.maximum(0.0, dist - margin)

        # labels arrive in both layouts -> pure VPU broadcast compare.
        sim = (tr_ref[...] == tc_ref[...]).astype(jnp.float32)
        gm_pos = sim * same
        gm_neg = (1.0 - sim) * hinge
        if mode == 'both':
            gm = gm_neg + gm_pos
        elif mode == 'pos':
            gm = gm_pos + (1.0 - sim) * (-1e7)
        else:
            gm = gm_neg + sim * (-1e7)
        gm_ref[...] = gm

    if single_k:
        # tk == D: single reduction step, no accumulator state at all.
        epilogue(prod)
    else:
        k = pl.program_id(2)

        @pl.when(k == 0)
        def _():
            gm_ref[...] = jnp.zeros_like(gm_ref)

        # Accumulate directly into the VMEM-resident output tile (no scratch).
        gm_ref[...] += prod

        @pl.when(k == pl.num_programs(2) - 1)
        def _():
            epilogue(gm_ref[...])


def compute_ground_metric(inputs, targets, margin=ALPHA,
                          relative_margin=REL_MARGIN, mode='both',
                          norm=False, mxu_dtype=jnp.bfloat16):
    """Ground-metric matrix GM (B, B) via a tiled Pallas kernel.

    mxu_dtype: dtype of the matmul operands (bf16 by default for MXU
    throughput; pass None for f32 operands / bit-tighter parity). Elementwise
    hinge math and the distance accumulation stay in f32."""
    B, D = inputs.shape
    x_f32 = inputs.astype(jnp.float32)

    # Pad both axes to multiples of 128: lane-dense unmasked GM stores, and
    # every BlockSpec trivially satisfies the (8,128) rule. Padded feature
    # columns are zero (Gram unchanged); padded rows get a sentinel label and
    # are sliced away before the matching step.
    B_pad = _round_up(B, 128)
    D_pad = _round_up(D, 128)

    x_pad = jnp.zeros((B_pad, D_pad), jnp.float32).at[:B, :D].set(x_f32)
    x_mxu = x_pad if mxu_dtype is None else x_pad.astype(mxu_dtype)
    x_mxu_t = x_mxu.T                                  # RHS as (D_pad, B_pad)

    t_pad = jnp.full((B_pad,), -1, jnp.int32).at[:B].set(
        targets.astype(jnp.int32))
    t_col = t_pad.reshape(B_pad, 1)                    # (B_pad, 1) i32
    t_row = t_pad.reshape(1, B_pad)                    # (1, B_pad) i32

    in_itemsize = jnp.dtype(x_mxu.dtype).itemsize
    _, budget = _vmem_budget()
    tm, tn, tk = _choose_tiles(B_pad, D_pad, in_itemsize, budget)
    grid = (B_pad // tm, B_pad // tn, D_pad // tk)
    single_k = grid[2] == 1

    operands = [x_mxu, x_mxu_t]
    in_specs = [
        pl.BlockSpec((tm, tk), lambda i, j, k: (i, k)),   # x rows    (tm, tk)
        pl.BlockSpec((tk, tn), lambda i, j, k: (k, j)),   # x.T cols  (tk, tn)
    ]
    if not norm:
        # f32 row norms in both layouts (only needed for the norm=False path).
        sq_col = jnp.sum(x_pad * x_pad, axis=1, keepdims=True)  # (B_pad, 1)
        sq_row = sq_col.reshape(1, B_pad)                       # (1, B_pad)
        operands += [sq_col, sq_row]
        in_specs += [
            pl.BlockSpec((tm, 1), lambda i, j, k: (i, 0)),      # |x_i|^2
            pl.BlockSpec((1, tn), lambda i, j, k: (0, j)),      # |x_j|^2
        ]
    operands += [t_col, t_row]
    in_specs += [
        pl.BlockSpec((tm, 1), lambda i, j, k: (i, 0)),          # labels (col)
        pl.BlockSpec((1, tn), lambda i, j, k: (0, j)),          # labels (row)
    ]

    footprint = _tile_footprint_bytes(tm, tn, tk, in_itemsize)
    vmem_limit = int(min(max(int(footprint * 1.5) + (4 << 20), 32 << 20),
                         budget))

    kernel = functools.partial(
        _gm_kernel, margin=float(margin),
        relative_margin=float(relative_margin), mode=mode, norm=norm,
        single_k=single_k)

    gm_pad = pl.pallas_call(
        kernel,
        out_shape=jax.ShapeDtypeStruct((B_pad, B_pad), jnp.float32),
        grid_spec=pltpu.PrefetchScalarGridSpec(
            num_scalar_prefetch=0,
            grid=grid,
            in_specs=in_specs,
            out_specs=pl.BlockSpec((tm, tn), lambda i, j, k: (i, j)),
        ),
        compiler_params=pltpu.CompilerParams(
            dimension_semantics=("parallel", "parallel", "arbitrary"),
            vmem_limit_bytes=vmem_limit),
    )(*operands)
    return gm_pad[:B, :B]


def km_run_perm(gm_np):
    """Kuhn-Munkres (max-weight perfect matching) on the ground-metric matrix.

    Exact brute-force implementation, matching the role of the external
    km_algorithm.KM_run. Returns the column permutation so the caller can do
    an O(B) gather instead of a dense (B,B) multiply."""
    B = gm_np.shape[0]
    assert B <= 10, "brute-force matching only valid for small batch sizes"
    rows = np.arange(B)
    best_perm, best_val = None, -np.inf
    for perm in itertools.permutations(range(B)):
        v = gm_np[rows, list(perm)].sum()
        if v > best_val:
            best_val, best_perm = v, perm
    return np.asarray(best_perm, dtype=np.int32)


def mvp_loss_forward(inputs, targets, mode='both', norm=False):
    """Full MvpLoss.forward: GM via Pallas, KM on host, O(B) permutation gather."""
    gm = compute_ground_metric(inputs, targets, mode=mode, norm=norm)
    perm = km_run_perm(np.asarray(jax.device_get(gm), dtype=np.float64))
    # T is a permutation matrix -> sum(GM * T) == sum_i GM[i, perm[i]].
    B = gm.shape[0]
    loss = jnp.sum(gm[jnp.arange(B), jnp.asarray(perm)])
    return loss, gm, perm


if __name__ == "__main__":
    key = jax.random.PRNGKey(0)
    B, D = 8, 32
    kx, kt, kk = jax.random.split(key, 3)

    inputs = jax.random.normal(kx, (B, D), dtype=jnp.float32)
    targets = jax.random.randint(kt, (B,), 0, 4, dtype=jnp.int32)
    # nn.Parameter(torch.Tensor(98, 1)) from __init__ -- deterministically
    # initialized here; it is unused in the forward pass.
    kernel_param = jax.random.normal(kk, (98, 1), dtype=jnp.float32)

    loss, gm, perm = mvp_loss_forward(inputs, targets, mode='both')
    jax.block_until_ready(loss)

    # Numpy reference of the Pallas hot path. MXU operands are bf16 with f32
    # accumulation, so the gram reference quantizes inputs identically; the
    # row norms stay full-precision f32, exactly as in the kernel.
    x64 = np.asarray(inputs, dtype=np.float64)
    xq = np.asarray(inputs.astype(jnp.bfloat16).astype(jnp.float32),
                    dtype=np.float64)
    t = np.asarray(targets)
    sq = (x64 * x64).sum(1, keepdims=True)
    dist = sq + sq.T - 2.0 * xq @ xq.T
    sim = (t[:, None] == t[None, :]).astype(np.float64)
    gm_ref = sim * np.maximum(0.0, dist - ALPHA) \
        + (1.0 - sim) * np.maximum(0.0, (ALPHA + REL_MARGIN) - dist)
    np.testing.assert_allclose(np.asarray(gm), gm_ref, rtol=1e-4, atol=1e-2)

    rows = np.arange(B)
    loss_ref = gm_ref[rows, np.asarray(perm)].sum()
    np.testing.assert_allclose(float(loss), loss_ref, rtol=1e-4, atol=1e-2)

    # Exercise the norm=True branch (no row-norm operands in the kernel).
    gm_norm = compute_ground_metric(inputs, targets, mode='both', norm=True)
    jax.block_until_ready(gm_norm)
    gram_ref = xq @ xq.T
    gm_norm_ref = sim * np.maximum(0.0, (ALPHA + REL_MARGIN) - gram_ref) \
        + (1.0 - sim) * np.maximum(0.0, gram_ref - ALPHA)
    np.testing.assert_allclose(np.asarray(gm_norm), gm_norm_ref,
                               rtol=1e-4, atol=1e-2)

    print("KERNEL_OK")
</pallas_src>

<mosaic_0001>
module attributes {stable_mosaic.version = 11 : i64} {
  func.func @_gm_kernel(%arg0: i32, %arg1: i32, %arg2: i32, %arg3: memref<128x128xbf16, #tpu.memory_space<vmem>>, %arg4: memref<128x128xbf16, #tpu.memory_space<vmem>>, %arg5: memref<128x1xf32, #tpu.memory_space<vmem>>, %arg6: memref<1x128xf32, #tpu.memory_space<vmem>>, %arg7: memref<128x1xi32, #tpu.memory_space<vmem>>, %arg8: memref<1x128xi32, #tpu.memory_space<vmem>>, %arg9: memref<128x128xf32, #tpu.memory_space<vmem>>) attributes {dimension_semantics = [#tpu.dimension_semantics<parallel>, #tpu.dimension_semantics<parallel>, #tpu.dimension_semantics<arbitrary>], iteration_bounds = array<i64: 1, 1, 1>, scalar_prefetch = 0 : i64, scratch_operands = 0 : i64, tpu.core_type = #tpu.core_type<tc>, window_params = [{transform_indices = @transform_0, window_bounds = array<i64: 128, 128>}, {transform_indices = @transform_1, window_bounds = array<i64: 128, 128>}, {transform_indices = @transform_2, window_bounds = array<i64: 128, 1>}, {transform_indices = @transform_3, window_bounds = array<i64: 1, 128>}, {transform_indices = @transform_4, window_bounds = array<i64: 128, 1>}, {transform_indices = @transform_5, window_bounds = array<i64: 1, 128>}, {transform_indices = @transform_6, window_bounds = array<i64: 128, 128>}]} {
    %c0 = arith.constant 0 : index
    %c0_0 = arith.constant 0 : index
    %0 = vector.load %arg3[%c0, %c0_0] : memref<128x128xbf16, #tpu.memory_space<vmem>>, vector<128x128xbf16>
    %c0_1 = arith.constant 0 : index
    %c0_2 = arith.constant 0 : index
    %1 = vector.load %arg4[%c0_1, %c0_2] : memref<128x128xbf16, #tpu.memory_space<vmem>>, vector<128x128xbf16>
    %cst = arith.constant dense<0.000000e+00> : vector<128x128xf32>
    %2 = tpu.matmul %0, %1, %cst {dimension_numbers = #tpu.dot_dimension_numbers<[1], [0], [0], [1], [0, 0, 1, 1], [], []>} : vector<128x128xbf16>, vector<128x128xbf16>, vector<128x128xf32> -> vector<128x128xf32>
    %c0_3 = arith.constant 0 : index
    %c0_4 = arith.constant 0 : index
    %3 = vector.load %arg5[%c0_3, %c0_4] : memref<128x1xf32, #tpu.memory_space<vmem>>, vector<128x1xf32>
    %c0_5 = arith.constant 0 : index
    %c0_6 = arith.constant 0 : index
    %4 = vector.load %arg6[%c0_5, %c0_6] : memref<1x128xf32, #tpu.memory_space<vmem>>, vector<1x128xf32>
    %5 = vector.broadcast %3 : vector<128x1xf32> to vector<128x128xf32>
    %6 = vector.broadcast %4 : vector<1x128xf32> to vector<128x128xf32>
    %7 = arith.addf %5, %6 : vector<128x128xf32>
    %cst_7 = arith.constant 2.000000e+00 : f32
    %8 = vector.broadcast %cst_7 : f32 to vector<128x128xf32>
    %9 = arith.mulf %8, %2 : vector<128x128xf32>
    %10 = arith.subf %7, %9 : vector<128x128xf32>
    %cst_8 = arith.constant 4.000000e+02 : f32
    %11 = vector.broadcast %cst_8 : f32 to vector<128x128xf32>
    %12 = arith.subf %11, %10 : vector<128x128xf32>
    %cst_9 = arith.constant 0.000000e+00 : f32
    %13 = vector.broadcast %cst_9 : f32 to vector<128x128xf32>
    %14 = arith.maximumf %13, %12 : vector<128x128xf32>
    %cst_10 = arith.constant 2.000000e+02 : f32
    %15 = vector.broadcast %cst_10 : f32 to vector<128x128xf32>
    %16 = arith.subf %10, %15 : vector<128x128xf32>
    %cst_11 = arith.constant 0.000000e+00 : f32
    %17 = vector.broadcast %cst_11 : f32 to vector<128x128xf32>
    %18 = arith.maximumf %17, %16 : vector<128x128xf32>
    %c0_12 = arith.constant 0 : index
    %c0_13 = arith.constant 0 : index
    %19 = vector.load %arg7[%c0_12, %c0_13] : memref<128x1xi32, #tpu.memory_space<vmem>>, vector<128x1xi32>
    %c0_14 = arith.constant 0 : index
    %c0_15 = arith.constant 0 : index
    %20 = vector.load %arg8[%c0_14, %c0_15] : memref<1x128xi32, #tpu.memory_space<vmem>>, vector<1x128xi32>
    %21 = vector.broadcast %19 : vector<128x1xi32> to vector<128x128xi32>
    %22 = vector.broadcast %20 : vector<1x128xi32> to vector<128x128xi32>
    %23 = arith.cmpi eq, %21, %22 : vector<128x128xi32>
    %24 = arith.extui %23 : vector<128x128xi1> to vector<128x128xi32>
    %25 = arith.sitofp %24 : vector<128x128xi32> to vector<128x128xf32>
    %26 = arith.mulf %25, %18 : vector<128x128xf32>
    %cst_16 = arith.constant 1.000000e+00 : f32
    %27 = vector.broadcast %cst_16 : f32 to vector<128x128xf32>
    %28 = arith.subf %27, %25 : vector<128x128xf32>
    %29 = arith.mulf %28, %14 : vector<128x128xf32>
    %30 = arith.addf %29, %26 : vector<128x128xf32>
    %c0_17 = arith.constant 0 : index
    %c0_18 = arith.constant 0 : index
    %31 = vector.load %arg9[%c0_17, %c0_18] : memref<128x128xf32, #tpu.memory_space<vmem>>, vector<128x128xf32>
    tpu.vector_store %arg9[%c0_17, %c0_18], %30 {strides = array<i32>} : memref<128x128xf32, #tpu.memory_space<vmem>>, vector<128x128xf32>,
    return
  }
  func.func @transform_0(%arg0: i32, %arg1: i32, %arg2: i32) -> (i32, i32) {
    %c0_i32 = arith.constant 0 : i32
    return %arg0, %arg2 : i32, i32
  }
  func.func @transform_1(%arg0: i32, %arg1: i32, %arg2: i32) -> (i32, i32) {
    %c0_i32 = arith.constant 0 : i32
    return %arg2, %arg1 : i32, i32
  }
  func.func @transform_2(%arg0: i32, %arg1: i32, %arg2: i32) -> (i32, i32) {
    %c0_i32 = arith.constant 0 : i32
    %c0_i32_0 = arith.constant 0 : i32
    return %arg0, %c0_i32 : i32, i32
  }
  func.func @transform_3(%arg0: i32, %arg1: i32, %arg2: i32) -> (i32, i32) {
    %c0_i32 = arith.constant 0 : i32
    %c0_i32_0 = arith.constant 0 : i32
    return %c0_i32, %arg1 : i32, i32
  }
  func.func @transform_4(%arg0: i32, %arg1: i32, %arg2: i32) -> (i32, i32) {
    %c0_i32 = arith.constant 0 : i32
    %c0_i32_0 = arith.constant 0 : i32
    return %arg0, %c0_i32 : i32, i32
  }
  func.func @transform_5(%arg0: i32, %arg1: i32, %arg2: i32) -> (i32, i32) {
    %c0_i32 = arith.constant 0 : i32
    %c0_i32_0 = arith.constant 0 : i32
    return %c0_i32, %arg1 : i32, i32
  }
  func.func @transform_6(%arg0: i32, %arg1: i32, %arg2: i32) -> (i32, i32) {
    %c0_i32 = arith.constant 0 : i32
    return %arg0, %arg1 : i32, i32
  }
}

</mosaic_0001>

<bundles_post_ra>
// kernel: tpu_custom_call.1
= control target key start
LH: loop header
LB: loop body
LE: loop exit
PB: predicated region body
PF: predicated region fallthrough
CT: control target
= control target key end

     0   :  { %v839_v2 = vmov 0   ;;  %s1174_s0 = inlined_call_operand.vmem [shape: bf16[128,128], index: 0, kind: input, shape index: {}]   ;;  %s1175_s1 = inlined_call_operand.vmem [shape: bf16[128,128], index: 1, kind: input, shape index: {}]   ;;  %s1176_s2 = inlined_call_operand.vmem [shape: f32[128,1], index: 2, kind: input, shape index: {}]   ;;  %s1177_s3 = inlined_call_operand.vmem [shape: f32[1,128], index: 3, kind: input, shape index: {}]   ;;  %s1178_s4 = inlined_call_operand.vmem [shape: s32[128,1], index: 4, kind: input, shape index: {}]   ;;  %s1179_s5 = inlined_call_operand.vmem [shape: s32[1,128], index: 5, kind: input, shape index: {}]   ;;  %s1180_s6 = inlined_call_operand.hbm [shape: f32[128,128], index: 6, kind: output, shape index: {}]  }
   0x1   :  { %v799_v0 = vld [vmem:[%s1175_s1] sm:$0xff]   ;;  %v800_v1 = vld [vmem:[%s1175_s1 + $0x8] sm:$0xff]   ;;  %798 = vset.pattern.permute.xlu1 %v839_v2  ;;  %797 = vset.pattern.permute.xlu0 %v839_v2  ;;  %v252_v3 = vld [vmem:[%s1176_s2 + $0x10] sm:$0xff] }
   0x2   :  { %744 = vmatprep.subr.bf16.mxu0 %v799_v0  ;;  %776 = vmatprep.subr.bf16.mxu1 %v799_v0  ;;  %v250_v4 = vld [vmem:[%s1176_s2] sm:$0xff]  ;;  %v801_v5 = vld [vmem:[%s1175_s1 + $0x10] sm:$0xff]   ;;  %v253_v6 = vld [vmem:[%s1176_s2 + $0x18] sm:$0xff] }
   0x3   :  { %745 = vmatpush3.bf16.msra.mxu0 %v799_v0  ;;  %784 = vmatpush3.bf16.msra.mxu1 %v799_v0  ;;  %v251_v7 = vld [vmem:[%s1176_s2 + $0x8] sm:$0xff]  ;;  %v802_v8 = vld [vmem:[%s1175_s1 + $0x18] sm:$0xff]   ;;  %v254_v10 = vld [vmem:[%s1176_s2 + $0x20] sm:$0xff] }
   0x4   :  { %746 = vmatprep.subr.bf16.mxu0 %v800_v1  ;;  %777 = vmatprep.subr.bf16.mxu1 %v800_v1  ;;  %v255_v9 = vld [vmem:[%s1176_s2 + $0x28] sm:$0xff]  ;;  %v803_v11 = vld [vmem:[%s1175_s1 + $0x20] sm:$0xff]   ;;  %v257_v12 = vld [vmem:[%s1176_s2 + $0x38] sm:$0xff] }
   0x5   :  { %279 = vperm.xlu1 %798, %v252_v3   ;;  %269 = vperm.xlu0 %797, %v250_v4   ;;  %v807_v13 = vld [vmem:[%s1174_s0] sm:$0xff]   ;;  %v256_v14 = vld [vmem:[%s1176_s2 + $0x30] sm:$0xff]  ;;  %v804_v16 = vld [vmem:[%s1175_s1 + $0x28] sm:$0xff]  }
   0x6   :  { %760 = vmatprep.mubr.bf16.mxu0 %v807_v13  ;;  %v808_v15 = vld [vmem:[%s1174_s0 + $0x20] sm:$0xff]   ;;  %v259_v17 = vld [vmem:[%s1176_s2 + $0x48] sm:$0xff]  ;;  %v805_v19 = vld [vmem:[%s1175_s1 + $0x30] sm:$0xff]  }
   0x7   :  { %747 = vmatpush3.bf16.msra.mxu0 %v800_v1  ;;  %785 = vmatpush3.bf16.msra.mxu1 %v800_v1  ;;  %v258_v18 = vld [vmem:[%s1176_s2 + $0x40] sm:$0xff]  ;;  %v261_v20 = vld [vmem:[%s1176_s2 + $0x58] sm:$0xff]  ;;  %v260_v21 = vld [vmem:[%s1176_s2 + $0x50] sm:$0xff] }
   0x8   :  { %748 = vmatprep.subr.bf16.mxu0 %v801_v5  ;;  %778 = vmatprep.subr.bf16.mxu1 %v801_v5  ;;  %v806_v22 = vld [vmem:[%s1175_s1 + $0x38] sm:$0xff]   ;;  %v263_v23 = vld [vmem:[%s1176_s2 + $0x68] sm:$0xff]  ;;  %v262_v24 = vld [vmem:[%s1176_s2 + $0x60] sm:$0xff] }
   0x9   :  { %284 = vperm.xlu1 %798, %v253_v6   ;;  %274 = vperm.xlu0 %797, %v251_v7  }
   0xa   :  { %768 = vmatprep.mubr.bf16.mxu1 %v808_v15 }
   0xb   :  { %749 = vmatpush3.bf16.msra.mxu0 %v801_v5  ;;  %786 = vmatpush3.bf16.msra.mxu1 %v801_v5 }
   0xc   :  { %750 = vmatprep.subr.bf16.mxu0 %v802_v8  ;;  %779 = vmatprep.subr.bf16.mxu1 %v802_v8 }
   0xd   :  { %294 = vperm.xlu1 %798, %v255_v9   ;;  %289 = vperm.xlu0 %797, %v254_v10  }
   0xf   :  { %751 = vmatpush3.bf16.msra.mxu0 %v802_v8  ;;  %787 = vmatpush3.bf16.msra.mxu1 %v802_v8 }
  0x10   :  { %752 = vmatprep.subr.bf16.mxu0 %v803_v11  ;;  %780 = vmatprep.subr.bf16.mxu1 %v803_v11 }
  0x11   :  { %304 = vperm.xlu1 %798, %v257_v12   ;;  %299 = vperm.xlu0 %797, %v256_v14  }
  0x13   :  { %753 = vmatpush3.bf16.msra.mxu0 %v803_v11  ;;  %788 = vmatpush3.bf16.msra.mxu1 %v803_v11 }
  0x14   :  { %754 = vmatprep.subr.bf16.mxu0 %v804_v16  ;;  %781 = vmatprep.subr.bf16.mxu1 %v804_v16 }
  0x15   :  { %314 = vperm.xlu1 %798, %v259_v17   ;;  %309 = vperm.xlu0 %797, %v258_v18  }
  0x17   :  { %755 = vmatpush3.bf16.msra.mxu0 %v804_v16  ;;  %789 = vmatpush3.bf16.msra.mxu1 %v804_v16 }
  0x18   :  { %756 = vmatprep.subr.bf16.mxu0 %v805_v19  ;;  %782 = vmatprep.subr.bf16.mxu1 %v805_v19 }
  0x19   :  { %324 = vperm.xlu1 %798, %v261_v20   ;;  %319 = vperm.xlu0 %797, %v260_v21  }
  0x1b   :  { %757 = vmatpush3.bf16.msra.mxu0 %v805_v19  ;;  %790 = vmatpush3.bf16.msra.mxu1 %v805_v19 }
  0x1c   :  { %11 = vsyncpa [#allocation3], 0  ;;  %758 = vmatprep.subr.bf16.mxu0 %v806_v22  ;;  %783 = vmatprep.subr.bf16.mxu1 %v806_v22  ;;  %v809_v25 = vld [vmem:[%s1174_s0 + $0x8] sm:$0xff]   ;;  %v265_v27 = vld [vmem:[%s1176_s2 + $0x78] sm:$0xff] }
  0x1d   :  { %334 = vperm.xlu1 %798, %v263_v23   ;;  %329 = vperm.xlu0 %797, %v262_v24   ;;  %v810_v26 = vld [vmem:[%s1174_s0 + $0x28] sm:$0xff]   ;;  %v264_v28 = vld [vmem:[%s1176_s2 + $0x70] sm:$0xff]  ;;  %v465_v32 = vld [vmem:[%s1178_s4] sm:$0xff] }
  0x1e   :  { %v811_v29 = vld [vmem:[%s1174_s0 + $0x10] sm:$0xff]   ;;  %v466_v31 = vld [vmem:[%s1178_s4 + $0x8] sm:$0xff]  ;;  %v813_v33 = vld [vmem:[%s1174_s0 + $0x18] sm:$0xff]  }
  0x1f   :  { %759 = vmatpush3.bf16.msra.mxu0 %v806_v22  ;;  %791 = vmatpush3.bf16.msra.mxu1 %v806_v22  ;;  %v812_v30 = vld [vmem:[%s1174_s0 + $0x30] sm:$0xff]   ;;  %v814_v34 = vld [vmem:[%s1174_s0 + $0x38] sm:$0xff]   ;;  %v470_v37 = vld [vmem:[%s1178_s4 + $0x28] sm:$0xff] }
  0x20   :  { %v468_v35 = vld [vmem:[%s1178_s4 + $0x18] sm:$0xff]  ;;  %v467_v36 = vld [vmem:[%s1178_s4 + $0x10] sm:$0xff]  ;;  %v469_v38 = vld [vmem:[%s1178_s4 + $0x20] sm:$0xff] }
  0x21   :  { %344 = vperm.xlu1 %798, %v265_v27   ;;  %339 = vperm.xlu0 %797, %v264_v28   ;;  %v472_v39 = vld [vmem:[%s1178_s4 + $0x38] sm:$0xff]  ;;  %v471_v40 = vld [vmem:[%s1178_s4 + $0x30] sm:$0xff]  ;;  %v474_v41 = vld [vmem:[%s1178_s4 + $0x48] sm:$0xff]  ;;  %v840_v27 = vmov 0.0  }
  0x22   :  { %761 = vmatmul.mubr.bf16.vlgmr.msra.gmra.mrb[0].mxu0 %v809_v25  ;;  %769 = vmatmul.mubr.bf16.vlgmr.msra.gmra.mrb[0].mxu1 %v810_v26  ;;  %v473_v42 = vld [vmem:[%s1178_s4 + $0x40] sm:$0xff]  ;;  %v476_v43 = vld [vmem:[%s1178_s4 + $0x58] sm:$0xff]  ;;  %v475_v44 = vld [vmem:[%s1178_s4 + $0x50] sm:$0xff] }
  0x23   :  { %764 = vmatprep.mubr.bf16.mxu0 %v811_v29  ;;  %772 = vmatprep.mubr.bf16.mxu1 %v812_v30  ;;  %v478_v45 = vld [vmem:[%s1178_s4 + $0x68] sm:$0xff]  ;;  %v477_v46 = vld [vmem:[%s1178_s4 + $0x60] sm:$0xff]  ;;  %v480_v47 = vld [vmem:[%s1178_s4 + $0x78] sm:$0xff] }
  0x24   :  { %v479_v48 = vld [vmem:[%s1178_s4 + $0x70] sm:$0xff]  ;;  %v694_v13 = vld [vmem:[%s1177_s3] ss:$0 sm:$0xff]  ;;  %s841_s3 = smov [#allocation2]  }
  0x25   :  { %486 = vperm.xlu1 %798, %v466_v31   ;;  %483 = vperm.xlu0 %797, %v465_v32   ;;  %v711_v14 = vld [vmem:[%s1179_s5] ss:$0 sm:$0xff]  ;;  %s667_s5 = sshll.u32 %s841_s3, 4  ;;  %s668_s5 = int_to_ptr.vmem [resolvable:$true] %s667_s5 }
  0x26   :  { %s815_s19 = scalar_lea.vmem %s668_s5, 2048  ;;  %p820_p1 = scmp.lt.s32.totalorder %s668_s5, %s668_s5 }
  0x27   :  { %p816_p0 = scmp.ne.s32.totalorder %s668_s5, %s815_s19  ;;  %p821_p2 = scmp.lt.s32.totalorder %s815_s19, %s815_s19 }
  0x29   :  { %492 = vperm.xlu1 %798, %v468_v35   ;;  %489 = vperm.xlu0 %797, %v467_v36   ;;  %p822_p3 = por %p821_p2, %p820_p1 }
  0x2a   :  { %765 = vmatmul.mubr.bf16.gmra.mrb[4].mxu0 %v813_v33  ;;  %773 = vmatmul.mubr.bf16.gmra.mrb[4].mxu1 %v814_v34 }
  0x2b   :  { %p823_p4 = pnand %p822_p3, %p816_p0 }
  0x2d   :  { %498 = vperm.xlu1 %798, %v470_v37   ;;  %495 = vperm.xlu0 %797, %v469_v38  }
  0x31   :  { %504 = vperm.xlu1 %798, %v472_v39   ;;  %501 = vperm.xlu0 %797, %v471_v40  }
  0x35   :  { %510 = vperm.xlu1 %798, %v474_v41   ;;  %507 = vperm.xlu0 %797, %v473_v42  }
  0x39   :  { %516 = vperm.xlu1 %798, %v476_v43   ;;  %513 = vperm.xlu0 %797, %v475_v44  }
  0x3d   :  { %522 = vperm.xlu1 %798, %v478_v45   ;;  %519 = vperm.xlu0 %797, %v477_v46  }
  0x41   :  { %528 = vperm.xlu1 %798, %v480_v47   ;;  %525 = vperm.xlu0 %797, %v479_v48  }
  0x84   :  { %v280_v49 = vpop.permute.xlu1 %279  ;;  %v270_v50 = vpop.permute.xlu0 %269 }
  0x85   :  { %v1029_v15 = vadd.f32 %v694_v13, %v280_v49  ;;  %v1031_v16 = vadd.f32 %v694_v13, %v270_v50 }
  0x88   :  { %v285_v51 = vpop.permute.xlu1 %284  ;;  %v275_v52 = vpop.permute.xlu0 %274 }
  0x89   :  { %v1033_v17 = vadd.f32 %v694_v13, %v285_v51  ;;  %v1035_v18 = vadd.f32 %v694_v13, %v275_v52 }
  0x8c   :  { %v295_v53 = vpop.permute.xlu1 %294  ;;  %v290_v54 = vpop.permute.xlu0 %289 }
  0x8d   :  { %v1037_v21 = vadd.f32 %v694_v13, %v295_v53  ;;  %v1039_v22 = vadd.f32 %v694_v13, %v290_v54 }
  0x90   :  { %v305_v55 = vpop.permute.xlu1 %304  ;;  %v300_v56 = vpop.permute.xlu0 %299 }
  0x91   :  { %v1041_v23 = vadd.f32 %v694_v13, %v305_v55  ;;  %v1043_v24 = vadd.f32 %v694_v13, %v300_v56 }
  0x94   :  { %v315_v57 = vpop.permute.xlu1 %314  ;;  %v310_v58 = vpop.permute.xlu0 %309 }
  0x95   :  { %v1045_v25 = vadd.f32 %v694_v13, %v315_v57  ;;  %v1047_v26 = vadd.f32 %v694_v13, %v310_v58 }
  0x98   :  { %v325_v59 = vpop.permute.xlu1 %324  ;;  %v320_v60 = vpop.permute.xlu0 %319 }
  0x99   :  { %v1053_v30 = vadd.f32 %v694_v13, %v325_v59  ;;  %v363_v31 = vadd.f32 %v694_v13, %v320_v60 }
  0x9c   :  { %v335_v61 = vpop.permute.xlu1 %334  ;;  %v330_v62 = vpop.permute.xlu0 %329 }
  0x9d   :  { %v1059_v34 = vadd.f32 %v694_v13, %v335_v61  ;;  %v1061_v35 = vadd.f32 %v694_v13, %v330_v62 }
  0xa0   :  { %v345_v63 = vpop.permute.xlu1 %344  ;;  %v340_v0 = vpop.permute.xlu0 %339 }
  0xa1   :  { %v1063_v36 = vadd.f32 %v694_v13, %v345_v63  ;;  %v1065_v37 = vadd.f32 %v694_v13, %v340_v0 }
  0xa4   :  { %v487_v1 = vpop.permute.xlu1 %486  ;;  %v484_v2 = vpop.permute.xlu0 %483 }
  0xa5   :  { %vm535_vm0 = vcmp.eq.s32.totalorder %v487_v1, %v711_v14  ;;  %vm534_vm1 = vcmp.eq.s32.totalorder %v484_v2, %v711_v14 }
  0xa6   :  { %v1049_v28 = vsel %vm535_vm0, 1.0, %v840_v27  ;;  %v1051_v29 = vsel %vm534_vm1, 1.0, %v840_v27 }
  0xa7   :  { %v599_v38 = vsub.f32 1.0, %v1049_v28  ;;  %v598_v39 = vsub.f32 1.0, %v1051_v29 }
  0xa8   :  { %v493_v3 = vpop.permute.xlu1 %492  ;;  %v490_v4 = vpop.permute.xlu0 %489 }
  0xa9   :  { %vm537_vm2 = vcmp.eq.s32.totalorder %v493_v3, %v711_v14  ;;  %vm536_vm3 = vcmp.eq.s32.totalorder %v490_v4, %v711_v14 }
  0xaa   :  { %v1055_v32 = vsel %vm537_vm2, 1.0, %v840_v27  ;;  %v1057_v33 = vsel %vm536_vm3, 1.0, %v840_v27 }
  0xab   :  { %v601_v40 = vsub.f32 1.0, %v1055_v32  ;;  %v600_v41 = vsub.f32 1.0, %v1057_v33 }
  0xac   :  { %v499_v5 = vpop.permute.xlu1 %498  ;;  %v496_v6 = vpop.permute.xlu0 %495 }
  0xad   :  { %vm539_vm4 = vcmp.eq.s32.totalorder %v499_v5, %v711_v14  ;;  %vm538_vm5 = vcmp.eq.s32.totalorder %v496_v6, %v711_v14 }
  0xae   :  { %v1071_v44 = vsel %vm539_vm4, 1.0, %v840_v27  ;;  %v1073_v45 = vsel %vm538_vm5, 1.0, %v840_v27 }
  0xb0   :  { %v505_v7 = vpop.permute.xlu1 %504  ;;  %v502_v8 = vpop.permute.xlu0 %501 }
  0xb1   :  { %vm541_vm6 = vcmp.eq.s32.totalorder %v505_v7, %v711_v14  ;;  %vm540_vm7 = vcmp.eq.s32.totalorder %v502_v8, %v711_v14 }
  0xb2   :  { %v1075_v46 = vsel %vm541_vm6, 1.0, %v840_v27  ;;  %v1077_v47 = vsel %vm540_vm7, 1.0, %v840_v27 }
  0xb4   :  { %v511_v9 = vpop.permute.xlu1 %510  ;;  %v508_v10 = vpop.permute.xlu0 %507 }
  0xb5   :  { %vm543_vm8 = vcmp.eq.s32.totalorder %v511_v9, %v711_v14  ;;  %vm542_vm9 = vcmp.eq.s32.totalorder %v508_v10, %v711_v14 }
  0xb6   :  { %v1079_v48 = vsel %vm543_vm8, 1.0, %v840_v27  ;;  %v1081_v49 = vsel %vm542_vm9, 1.0, %v840_v27 }
  0xb7   :  { %v606_v61 = vsub.f32 1.0, %v1081_v49 }
  0xb8   :  { %v517_v11 = vpop.permute.xlu1 %516  ;;  %v514_v12 = vpop.permute.xlu0 %513 }
  0xb9   :  { %vm545_vm10 = vcmp.eq.s32.totalorder %v517_v11, %v711_v14  ;;  %vm544_vm11 = vcmp.eq.s32.totalorder %v514_v12, %v711_v14 }
  0xba   :  { %v1083_v50 = vsel %vm545_vm10, 1.0, %v840_v27  ;;  %v722_v51 = vsel %vm544_vm11, 1.0, %v840_v27 }
  0xbb   :  { %v609_v62 = vsub.f32 1.0, %v1083_v50  ;;  %v608_v63 = vsub.f32 1.0, %v722_v51 }
  0xbc   :  { %v523_v19 = vpop.permute.xlu1 %522  ;;  %v520_v20 = vpop.permute.xlu0 %519 }
  0xbd   :  { %vm547_vm12 = vcmp.eq.s32.totalorder %v523_v19, %v711_v14  ;;  %vm546_vm13 = vcmp.eq.s32.totalorder %v520_v20, %v711_v14 }
  0xbe   :  { %v1087_v54 = vsel %vm547_vm12, 1.0, %v840_v27  ;;  %v1089_v55 = vsel %vm546_vm13, 1.0, %v840_v27 }
  0xc0   :  { %v529_v42 = vpop.permute.xlu1 %528  ;;  %v526_v43 = vpop.permute.xlu0 %525 }
  0xc1   :  { %vm549_vm14 = vcmp.eq.s32.totalorder %v529_v42, %v711_v14  ;;  %vm548_vm15 = vcmp.eq.s32.totalorder %v526_v43, %v711_v14 }
  0xc2   :  { %v1093_v58 = vsel %vm549_vm14, 1.0, %v840_v27  ;;  %v1095_v59 = vsel %vm548_vm15, 1.0, %v840_v27 }
  0xf5   :  { %v762_v0 = vpop.f32.mrb[0].mxu0  ;;  %v770_v1 = vpop.f32.mrb[0].mxu1 }
  0xf6   :  { %v371_v4 = vmul.f32 2.0, %v762_v0  ;;  %v379_v5 = vmul.f32 2.0, %v770_v1  ;;  %v187_v6 = vpop.f32.mrb[1].mxu0  ;;  %v219_v7 = vpop.f32.mrb[1].mxu1 }
  0xf7   :  { %v369_v10 = vmul.f32 2.0, %v187_v6  ;;  %v377_v11 = vmul.f32 2.0, %v219_v7  ;;  %v763_v12 = vpop.f32.mrb[2].mxu0  ;;  %v771_v13 = vpop.f32.mrb[2].mxu1 }
  0xf8   :  { %v387_v14 = vsub.f32 %v1029_v15, %v371_v4  ;;  %v395_v19 = vsub.f32 %v363_v31, %v379_v5  ;;  %v372_v20 = vmul.f32 2.0, %v763_v12  ;;  %v380_v27 = vmul.f32 2.0, %v771_v13  ;;  %v190_v42 = vpop.f32.mrb[3].mxu0  ;;  %v222_v43 = vpop.f32.mrb[3].mxu1 }
  0xf9   :  { %v385_v0 = vsub.f32 %v1031_v16, %v369_v10  ;;  %v393_v1 = vsub.f32 %v1047_v26, %v377_v11  ;;  %v370_v2 = vmul.f32 2.0, %v190_v42  ;;  %v378_v52 = vmul.f32 2.0, %v222_v43 }
  0xfa   :  { %v403_v8 = vsub.f32 400.0, %v387_v14  ;;  %v697_v56 = vadd.f32 -200.0, %v387_v14  ;;  %v411_v3 = vsub.f32 400.0, %v395_v19  ;;  %v705_v6 = vadd.f32 -200.0, %v395_v19 }
  0xfb   :  { %v401_v7 = vsub.f32 400.0, %v385_v0  ;;  %v695_v53 = vadd.f32 -200.0, %v385_v0  ;;  %v409_v9 = vsub.f32 400.0, %v393_v1  ;;  %v703_v57 = vadd.f32 -200.0, %v393_v1 }
  0xfc   :  { %v419_v15 = vmax.f32 %v403_v8, 0.0  ;;  %v451_v31 = vmax.f32 %v697_v56, 0.0  ;;  %v427_v4 = vmax.f32 %v411_v3, 0.0  ;;  %v459_v5 = vmax.f32 %v705_v6, 0.0 }
  0xfd   :  { %v417_v12 = vmax.f32 %v401_v7, 0.0  ;;  %v449_v13 = vmax.f32 %v695_v53, 0.0  ;;  %v425_v60 = vmax.f32 %v409_v9, 0.0  ;;  %v457_v16 = vmax.f32 %v703_v57, 0.0  ;;  %v766_v10 = vpop.f32.mrb[4].mxu0  ;;  %v774_v26 = vpop.f32.mrb[4].mxu1 }
  0xfe   :  { %v584_v11 = vmul.f32 %v1057_v33, %v451_v31  ;;  %v616_v14 = vmul.f32 %v600_v41, %v419_v15  ;;  %v592_v19 = vmul.f32 %v722_v51, %v459_v5  ;;  %v624_v42 = vmul.f32 %v608_v63, %v427_v4  ;;  %v203_v43 = vpop.f32.mrb[5].mxu0  ;;  %v235_v0 = vpop.f32.mrb[5].mxu1 }
  0xff   :  { %v582_v8 = vmul.f32 %v1051_v29, %v449_v13  ;;  %v614_v56 = vmul.f32 %v598_v39, %v417_v12  ;;  %v590_v53 = vmul.f32 %v1081_v49, %v457_v16  ;;  %v622_v3 = vmul.f32 %v606_v61, %v425_v60  ;;  %v767_v57 = vpop.f32.mrb[6].mxu0  ;;  %v775_v9 = vpop.f32.mrb[6].mxu1 }
 0x100   :  { %v632_v1 = vadd.f32 %v616_v14, %v584_v11  ;;  %v640_v6 = vadd.f32 %v624_v42, %v592_v19  ;;  %v388_v7 = vsub.f32 %v1033_v17, %v372_v20  ;;  %v396_v33 = vsub.f32 %v1053_v30, %v380_v27  ;;  %v206_v41 = vpop.f32.mrb[7].mxu0  ;;  %v238_v51 = vpop.f32.mrb[7].mxu1 }
 0x101   :  { %v630_v63 = vadd.f32 %v614_v56, %v582_v8  ;;  %v638_v15 = vadd.f32 %v622_v3, %v590_v53  ;;  %v386_v31 = vsub.f32 %v1035_v18, %v370_v2  ;;  %v394_v29 = vsub.f32 %v1045_v25, %v378_v52 }
 0x102   :  { %648 = vst [vmem:[#allocation2 + $0x10] sm:$0xff] %v632_v1  ;;  %656 = vst [vmem:[#allocation2 + $0x50] sm:$0xff] %v640_v6  ;;  %v404_v39 = vsub.f32 400.0, %v388_v7  ;;  %v698_v49 = vadd.f32 -200.0, %v388_v7  ;;  %v412_v60 = vsub.f32 400.0, %v396_v33  ;;  %v706_v61 = vadd.f32 -200.0, %v396_v33 }
 0x103   :  { %646 = vst [vmem:[#allocation2] sm:$0xff] %v630_v63  ;;  %654 = vst [vmem:[#allocation2 + $0x40] sm:$0xff] %v638_v15  ;;  %v402_v4 = vsub.f32 400.0, %v386_v31  ;;  %v696_v17 = vadd.f32 -200.0, %v386_v31  ;;  %v410_v20 = vsub.f32 400.0, %v394_v29  ;;  %v704_v30 = vadd.f32 -200.0, %v394_v29 }
 0x104   :  { %v420_v27 = vmax.f32 %v404_v39, 0.0  ;;  %v452_v5 = vmax.f32 %v698_v49, 0.0  ;;  %v428_v12 = vmax.f32 %v412_v60, 0.0  ;;  %v460_v13 = vmax.f32 %v706_v61, 0.0 }
 0x105   :  { %v418_v16 = vmax.f32 %v402_v4, 0.0  ;;  %v450_v18 = vmax.f32 %v696_v17, 0.0  ;;  %v426_v2 = vmax.f32 %v410_v20, 0.0  ;;  %v458_v25 = vmax.f32 %v704_v30, 0.0 }
 0x106   :  { %v585_v52 = vmul.f32 %v1055_v32, %v452_v5  ;;  %v617_v11 = vmul.f32 %v601_v40, %v420_v27  ;;  %v593_v14 = vmul.f32 %v1083_v50, %v460_v13  ;;  %v625_v19 = vmul.f32 %v609_v62, %v428_v12 }
 0x107   :  { %v583_v42 = vmul.f32 %v1049_v28, %v450_v18  ;;  %v615_v8 = vmul.f32 %v599_v38, %v418_v16  ;;  %v591_v56 = vmul.f32 %v1079_v48, %v458_v25  ;;  %v1181_v53 = vsub.f32 1.0, %v1079_v48 }
 0x108   :  { %v633_v1 = vadd.f32 %v617_v11, %v585_v52  ;;  %v641_v6 = vadd.f32 %v625_v19, %v593_v14  ;;  %v375_v7 = vmul.f32 2.0, %v766_v10  ;;  %v383_v32 = vmul.f32 2.0, %v774_v26 }
 0x109   :  { %v623_v3 = vmul.f32 %v1181_v53, %v426_v2  ;;  %v631_v40 = vadd.f32 %v615_v8, %v583_v42  ;;  %v373_v63 = vmul.f32 2.0, %v203_v43  ;;  %v381_v15 = vmul.f32 2.0, %v235_v0 }
 0x10a   :  { %649 = vst [vmem:[#allocation2 + $0x18] sm:$0xff] %v633_v1  ;;  %657 = vst [vmem:[#allocation2 + $0x58] sm:$0xff] %v641_v6  ;;  %v391_v50 = vsub.f32 %v1043_v24, %v375_v7  ;;  %v399_v28 = vsub.f32 %v1065_v37, %v383_v32  ;;  %v376_v38 = vmul.f32 2.0, %v767_v57  ;;  %v384_v62 = vmul.f32 2.0, %v775_v9 }
 0x10b   :  { %v639_v33 = vadd.f32 %v623_v3, %v591_v56  ;;  %647 = vst [vmem:[#allocation2 + $0x8] sm:$0xff] %v631_v40  ;;  %v389_v48 = vsub.f32 %v1039_v22, %v373_v63  ;;  %v397_v31 = vsub.f32 %v1061_v35, %v381_v15  ;;  %v374_v10 = vmul.f32 2.0, %v206_v41 }
 0x10c   :  { %v382_v26 = vmul.f32 2.0, %v238_v51  ;;  %v407_v29 = vsub.f32 400.0, %v391_v50  ;;  %v701_v39 = vadd.f32 -200.0, %v391_v50  ;;  %v415_v43 = vsub.f32 400.0, %v399_v28 }
 0x10d   :  { %655 = vst [vmem:[#allocation2 + $0x48] sm:$0xff] %v639_v33  ;;  %v709_v0 = vadd.f32 -200.0, %v399_v28  ;;  %v405_v49 = vsub.f32 400.0, %v389_v48  ;;  %v699_v60 = vadd.f32 -200.0, %v389_v48  ;;  %v413_v61 = vsub.f32 400.0, %v397_v31 }
 0x10e   :  { %v707_v24 = vadd.f32 -200.0, %v397_v31  ;;  %v423_v4 = vmax.f32 %v407_v29, 0.0  ;;  %v455_v37 = vmax.f32 %v701_v39, 0.0  ;;  %v431_v57 = vmax.f32 %v415_v43, 0.0 }
 0x10f   :  { %v463_v9 = vmax.f32 %v709_v0, 0.0  ;;  %v421_v17 = vmax.f32 %v405_v49, 0.0  ;;  %v453_v20 = vmax.f32 %v699_v60, 0.0  ;;  %v429_v30 = vmax.f32 %v413_v61, 0.0 }
 0x110   :  { %v461_v22 = vmax.f32 %v707_v24, 0.0  ;;  %v588_v35 = vmul.f32 %v1077_v47, %v455_v37  ;;  %v1182_v41 = vsub.f32 1.0, %v1077_v47  ;;  %v1183_v5 = vsub.f32 1.0, %v1095_v59 }
 0x111   :  { %v596_v27 = vmul.f32 %v1095_v59, %v463_v9  ;;  %v586_v13 = vmul.f32 %v1073_v45, %v453_v20  ;;  %v1184_v16 = vsub.f32 1.0, %v1073_v45  ;;  %v1185_v25 = vsub.f32 1.0, %v1089_v55 }
 0x112   :  { %v620_v51 = vmul.f32 %v1182_v41, %v423_v4  ;;  %v628_v12 = vmul.f32 %v1183_v5, %v431_v57  ;;  %v594_v2 = vmul.f32 %v1089_v55, %v461_v22  ;;  %v392_v47 = vsub.f32 %v1041_v23, %v376_v38 }
 0x113   :  { %v618_v18 = vmul.f32 %v1184_v16, %v421_v17  ;;  %v626_v52 = vmul.f32 %v1185_v25, %v429_v30  ;;  %v400_v19 = vsub.f32 %v1063_v36, %v384_v62  ;;  %v390_v59 = vsub.f32 %v1037_v21, %v374_v10 }
 0x114   :  { %v636_v11 = vadd.f32 %v620_v51, %v588_v35  ;;  %v644_v14 = vadd.f32 %v628_v12, %v596_v27  ;;  %v398_v56 = vsub.f32 %v1059_v34, %v382_v26  ;;  %v408_v45 = vsub.f32 400.0, %v392_v47 }
 0x115   :  { %v634_v42 = vadd.f32 %v618_v18, %v586_v13  ;;  %v642_v8 = vadd.f32 %v626_v52, %v594_v2  ;;  %v702_v53 = vadd.f32 -200.0, %v392_v47  ;;  %v416_v3 = vsub.f32 400.0, %v400_v19 }
 0x116   :  { %652 = vst [vmem:[#allocation2 + $0x30] sm:$0xff] %v636_v11  ;;  %660 = vst [vmem:[#allocation2 + $0x70] sm:$0xff] %v644_v14  ;;  %v710_v1 = vadd.f32 -200.0, %v400_v19  ;;  %v406_v55 = vsub.f32 400.0, %v390_v59  ;;  %v700_v6 = vadd.f32 -200.0, %v390_v59  ;;  %v414_v7 = vsub.f32 400.0, %v398_v56 }
 0x117   :  { %650 = vst [vmem:[#allocation2 + $0x20] sm:$0xff] %v634_v42  ;;  %658 = vst [vmem:[#allocation2 + $0x60] sm:$0xff] %v642_v8  ;;  %v708_v23 = vadd.f32 -200.0, %v398_v56  ;;  %v424_v32 = vmax.f32 %v408_v45, 0.0  ;;  %v456_v36 = vmax.f32 %v702_v53, 0.0  ;;  %v432_v40 = vmax.f32 %v416_v3, 0.0 }
 0x118   :  { %v464_v33 = vmax.f32 %v710_v1, 0.0  ;;  %v422_v63 = vmax.f32 %v406_v55, 0.0  ;;  %v454_v21 = vmax.f32 %v700_v6, 0.0  ;;  %v430_v15 = vmax.f32 %v414_v7, 0.0 }
 0x119   :  { %v462_v34 = vmax.f32 %v708_v23, 0.0  ;;  %v589_v50 = vmul.f32 %v1075_v46, %v456_v36  ;;  %v1186_v28 = vsub.f32 1.0, %v1075_v46  ;;  %v1187_v48 = vsub.f32 1.0, %v1093_v58 }
 0x11a   :  { %v597_v62 = vmul.f32 %v1093_v58, %v464_v33  ;;  %v587_v10 = vmul.f32 %v1071_v44, %v454_v21  ;;  %v1188_v26 = vsub.f32 1.0, %v1071_v44  ;;  %v1189_v43 = vsub.f32 1.0, %v1087_v54 }
 0x11b   :  { %v621_v38 = vmul.f32 %v1186_v28, %v424_v32  ;;  %v629_v31 = vmul.f32 %v1187_v48, %v432_v40  ;;  %v595_v39 = vmul.f32 %v1087_v54, %v462_v34 }
 0x11c   :  { %v619_v29 = vmul.f32 %v1188_v26, %v422_v63  ;;  %v627_v0 = vmul.f32 %v1189_v43, %v430_v15 }
 0x11d   :  { %v637_v49 = vadd.f32 %v621_v38, %v589_v50  ;;  %v645_v60 = vadd.f32 %v629_v31, %v597_v62 }
 0x11e   :  { %v635_v46 = vadd.f32 %v619_v29, %v587_v10  ;;  %v643_v61 = vadd.f32 %v627_v0, %v595_v39 }
 0x11f   :  { %653 = vst [vmem:[#allocation2 + $0x38] sm:$0xff] %v637_v49  ;;  %661 = vst [vmem:[#allocation2 + $0x78] sm:$0xff] %v645_v60 }
 0x120   :  { %651 = vst [vmem:[#allocation2 + $0x28] sm:$0xff] %v635_v46  ;;  %659 = vst [vmem:[#allocation2 + $0x68] sm:$0xff] %v643_v61 }
 0x121   :  { %826 = shalt.err (!%p823_p4)
}
 0x122   :  { %s827_s22 = scalar_lea.hbm %s1180_s6, 2048 }
 0x123   :  { %p828_p5 = scmp.ne.s32.totalorder %s1180_s6, %s827_s22  ;;  %p831_p6 = scmp.lt.u32.totalorder %s827_s22, %s1180_s6 }
 0x125   :  { %p833_p7 = pnand %p831_p6, %p828_p5 }
 0x127   :  { %836 = shalt.err (!%p833_p7)
}
 0x128   :  { %s842_s25 = smov 128   ;;  %s843_s26 = smov 8  }
 0x129   :  { %673 = dma.vmem_to_hbm [thread:$0]  %s668_s5, 2048, %s1180_s6, [#allocation3], %s842_s25, %s842_s25, %s843_s26  }
 0x12a   :  { %837 = dma.done.wait [#allocation3], 2048  }
 0x12b   :  { %838 = vsyncadd [#allocation3], 4294965248 }
 0x12c   :  { %677 = vsyncpa [#allocation3], 1 }

</bundles_post_ra>
